<compile_context>
chip_gen: v7x
topology: tpu7x:2x2x1
jax: 0.10.0
libtpu: 0.0.40
codegen_flags: <defaults>
</compile_context>

<pallas_src>
import jax
import jax.numpy as jnp
from jax import lax
from jax.experimental import pallas as pl
from jax.experimental.pallas import tpu as pltpu

d = 2
adj_list = [[1, 2, 3], [0, 2, 3], [0, 1, 3], [0, 1, 2], [5, 6], [4, 6], [4, 5], [1, 3]]
size_vertex = len(adj_list)  # 8


def deepwalk_kernel(idx_ref, phi_ref, phi2t_ref, out_ref):
    """One batch tile, fully on the VPU/XLU (no MXU).

    idx_ref   : (1, TB) int32  -- vertex indices, batch on lanes
    phi_ref   : (V, d)  f32    -- resident across grid steps
    phi2t_ref : (V, d)  f32    -- phi2 transposed, resident across grid steps
    out_ref   : (V, TB) f32    -- transposed output tile (lane-dense stores)
    """
    V, TB = out_ref.shape
    idx = idx_ref[...]                      # (1, TB) int32
    phi = phi_ref[...]                      # (V, d)
    phi2t = phi2t_ref[...]                  # (V, d)

    # Vectorized row gather hidden[b, :] = phi[idx[b], :]:
    # mask[v, b] = (idx[b] == v), built once per tile.
    vert = lax.broadcasted_iota(jnp.int32, (V, TB), 0)
    mask = vert == idx                      # (V, TB) bool (sublane broadcast of idx)

    out = jnp.zeros((V, TB), jnp.float32)
    for j in range(d):                      # d == 2 -> fully unrolled
        # h_j[b] = phi[idx[b], j]   (select + sublane reduce, XLU)
        hj = jnp.sum(jnp.where(mask, phi[:, j:j + 1], 0.0),
                     axis=0, keepdims=True)                 # (1, TB)
        # out_T[u, b] += phi2[j, u] * h_j[b]   (VPU broadcast-FMA, no MXU)
        out = out + phi2t[:, j:j + 1] * hj                  # (V,1)*(1,TB)->(V,TB)
    out_ref[...] = out


def deepwalk_forward_idx(idx, phi, phi2, *, tb=512):
    """out[b] = (one_hot(idx[b]) @ phi) @ phi2, computed by the Pallas kernel."""
    (B,) = idx.shape
    V, dd = phi.shape
    assert phi2.shape == (dd, V)

    # Batch tile size: multiple of 128 lanes, no bigger than needed.
    tb = max(128, (tb // 128) * 128)
    tb = min(tb, ((B + 127) // 128) * 128)
    Bp = ((B + tb - 1) // tb) * tb

    idx_p = jnp.pad(idx.astype(jnp.int32), (0, Bp - B)).reshape(1, Bp)
    phi2t = jnp.transpose(phi2).astype(jnp.float32)        # (V, d), layout plumbing

    out_t = pl.pallas_call(
        deepwalk_kernel,
        out_shape=jax.ShapeDtypeStruct((V, Bp), jnp.float32),
        grid=(Bp // tb,),
        in_specs=[
            pl.BlockSpec((1, tb), lambda i: (0, i)),    # index tile (batch on lanes)
            pl.BlockSpec((V, dd), lambda i: (0, 0)),    # phi: resident in VMEM
            pl.BlockSpec((V, dd), lambda i: (0, 0)),    # phi2^T: resident in VMEM
        ],
        out_specs=pl.BlockSpec((V, tb), lambda i: (0, i)),  # lane-dense output tiles
        compiler_params=pltpu.CompilerParams(
            dimension_semantics=("parallel",),          # megacore split on v7x
        ),
    )(idx_p, phi.astype(jnp.float32), phi2t)

    # Back to the module's (B, V) layout; wrapper-side transpose is layout plumbing.
    return out_t[:, :B].T


def deepwalk_forward(one_hot, phi, phi2, *, tb=512):
    """Matches Model.forward(one_hot). DeepWalk inputs are one-hot rows, so the
    row index is recovered and fed to the optimized index-gather kernel."""
    idx = jnp.argmax(one_hot, axis=-1).astype(jnp.int32)
    return deepwalk_forward_idx(idx, phi, phi2, tb=tb)


if __name__ == "__main__":
    key = jax.random.PRNGKey(0)
    k_phi, k_phi2, k_idx = jax.random.split(key, 3)

    # Deterministic parameter init (torch.rand -> uniform [0, 1)).
    phi = jax.random.uniform(k_phi, (size_vertex, d), dtype=jnp.float32)
    phi2 = jax.random.uniform(k_phi2, (d, size_vertex), dtype=jnp.float32)

    # Batch of vertex indices (DeepWalk usage); one-hot built only for the reference.
    batch = 1024
    idx = jax.random.randint(k_idx, (batch,), 0, size_vertex, dtype=jnp.int32)
    one_hot = jax.nn.one_hot(idx, size_vertex, dtype=jnp.float32)   # (B, V)

    out = jax.block_until_ready(deepwalk_forward_idx(idx, phi, phi2))
    out_oh = jax.block_until_ready(deepwalk_forward(one_hot, phi, phi2))

    # Pure-JAX reference with the original module's math.
    ref = (one_hot @ phi) @ phi2
    assert out.shape == (batch, size_vertex)
    assert out_oh.shape == (batch, size_vertex)
    assert jnp.allclose(out, ref, atol=1e-5, rtol=1e-5)
    assert jnp.allclose(out_oh, ref, atol=1e-5, rtol=1e-5)

    print("KERNEL_OK")
</pallas_src>

<mosaic_0001>
module attributes {stable_mosaic.version = 11 : i64} {
  func.func @deepwalk_kernel(%arg0: i32, %arg1: memref<1x512xi32, #tpu.memory_space<vmem>>, %arg2: memref<8x2xf32, #tpu.memory_space<vmem>>, %arg3: memref<8x2xf32, #tpu.memory_space<vmem>>, %arg4: memref<8x512xf32, #tpu.memory_space<vmem>>) attributes {dimension_semantics = [#tpu.dimension_semantics<parallel>], iteration_bounds = array<i64: 2>, scalar_prefetch = 0 : i64, scratch_operands = 0 : i64, tpu.core_type = #tpu.core_type<tc>, window_params = [{transform_indices = @transform_0, window_bounds = array<i64: 1, 512>}, {pipeline_mode = #tpu.pipeline_mode<synchronous>, transform_indices = @transform_1, window_bounds = array<i64: 8, 2>}, {pipeline_mode = #tpu.pipeline_mode<synchronous>, transform_indices = @transform_2, window_bounds = array<i64: 8, 2>}, {transform_indices = @transform_3, window_bounds = array<i64: 8, 512>}]} {
    %c0 = arith.constant 0 : index
    %c0_0 = arith.constant 0 : index
    %0 = vector.load %arg1[%c0, %c0_0] : memref<1x512xi32, #tpu.memory_space<vmem>>, vector<1x512xi32>
    %c0_1 = arith.constant 0 : index
    %c0_2 = arith.constant 0 : index
    %1 = vector.load %arg2[%c0_1, %c0_2] : memref<8x2xf32, #tpu.memory_space<vmem>>, vector<8x2xf32>
    %c0_3 = arith.constant 0 : index
    %c0_4 = arith.constant 0 : index
    %2 = vector.load %arg3[%c0_3, %c0_4] : memref<8x2xf32, #tpu.memory_space<vmem>>, vector<8x2xf32>
    %3 = tpu.iota {dimensions = array<i32: 0>} : vector<8x512xi32>
    %4 = vector.broadcast %0 : vector<1x512xi32> to vector<8x512xi32>
    %5 = arith.cmpi eq, %3, %4 : vector<8x512xi32>
    %cst = arith.constant 0.000000e+00 : f32
    %6 = vector.broadcast %cst : f32 to vector<8x512xf32>
    %7 = vector.extract_strided_slice %1 {offsets = [0, 0], sizes = [8, 1], strides = [1, 1]} : vector<8x2xf32> to vector<8x1xf32>
    %cst_5 = arith.constant 0.000000e+00 : f32
    %8 = vector.shape_cast %7 : vector<8x1xf32> to vector<8x1xf32>
    %9 = vector.broadcast %8 : vector<8x1xf32> to vector<8x512xf32>
    %10 = vector.broadcast %cst_5 : f32 to vector<8x512xf32>
    %11 = arith.select %5, %9, %10 : vector<8x512xi1>, vector<8x512xf32>
    %cst_6 = arith.constant dense<0.000000e+00> : vector<512xf32>
    %12 = vector.multi_reduction <add>, %11, %cst_6 [0] : vector<8x512xf32> to vector<512xf32>
    %13 = vector.shape_cast %12 : vector<512xf32> to vector<1x512xf32>
    %14 = vector.extract_strided_slice %2 {offsets = [0, 0], sizes = [8, 1], strides = [1, 1]} : vector<8x2xf32> to vector<8x1xf32>
    %15 = vector.broadcast %14 : vector<8x1xf32> to vector<8x512xf32>
    %16 = vector.broadcast %13 : vector<1x512xf32> to vector<8x512xf32>
    %17 = arith.mulf %15, %16 : vector<8x512xf32>
    %18 = arith.addf %6, %17 : vector<8x512xf32>
    %19 = vector.extract_strided_slice %1 {offsets = [0, 1], sizes = [8, 1], strides = [1, 1]} : vector<8x2xf32> to vector<8x1xf32>
    %cst_7 = arith.constant 0.000000e+00 : f32
    %20 = vector.shape_cast %19 : vector<8x1xf32> to vector<8x1xf32>
    %21 = vector.broadcast %20 : vector<8x1xf32> to vector<8x512xf32>
    %22 = vector.broadcast %cst_7 : f32 to vector<8x512xf32>
    %23 = arith.select %5, %21, %22 : vector<8x512xi1>, vector<8x512xf32>
    %cst_8 = arith.constant dense<0.000000e+00> : vector<512xf32>
    %24 = vector.multi_reduction <add>, %23, %cst_8 [0] : vector<8x512xf32> to vector<512xf32>
    %25 = vector.shape_cast %24 : vector<512xf32> to vector<1x512xf32>
    %26 = vector.extract_strided_slice %2 {offsets = [0, 1], sizes = [8, 1], strides = [1, 1]} : vector<8x2xf32> to vector<8x1xf32>
    %27 = vector.broadcast %26 : vector<8x1xf32> to vector<8x512xf32>
    %28 = vector.broadcast %25 : vector<1x512xf32> to vector<8x512xf32>
    %29 = arith.mulf %27, %28 : vector<8x512xf32>
    %30 = arith.addf %18, %29 : vector<8x512xf32>
    %c0_9 = arith.constant 0 : index
    %c0_10 = arith.constant 0 : index
    %31 = vector.load %arg4[%c0_9, %c0_10] : memref<8x512xf32, #tpu.memory_space<vmem>>, vector<8x512xf32>
    tpu.vector_store %arg4[%c0_9, %c0_10], %30 {strides = array<i32>} : memref<8x512xf32, #tpu.memory_space<vmem>>, vector<8x512xf32>,
    return
  }
  func.func @transform_0(%arg0: i32) -> (i32, i32) {
    %c0_i32 = arith.constant 0 : i32
    %c0_i32_0 = arith.constant 0 : i32
    return %c0_i32, %arg0 : i32, i32
  }
  func.func @transform_1(%arg0: i32) -> (i32, i32) {
    %c0_i32 = arith.constant 0 : i32
    %c0_i32_0 = arith.constant 0 : i32
    %c0_i32_1 = arith.constant 0 : i32
    return %c0_i32, %c0_i32_0 : i32, i32
  }
  func.func @transform_2(%arg0: i32) -> (i32, i32) {
    %c0_i32 = arith.constant 0 : i32
    %c0_i32_0 = arith.constant 0 : i32
    %c0_i32_1 = arith.constant 0 : i32
    return %c0_i32, %c0_i32_0 : i32, i32
  }
  func.func @transform_3(%arg0: i32) -> (i32, i32) {
    %c0_i32 = arith.constant 0 : i32
    %c0_i32_0 = arith.constant 0 : i32
    return %c0_i32, %arg0 : i32, i32
  }
}

</mosaic_0001>

<bundles_post_ra>
// kernel: tpu_custom_call.1
= control target key start
LH: loop header
LB: loop body
LE: loop exit
PB: predicated region body
PF: predicated region fallthrough
CT: control target
= control target key end

     0   :  { %8 = vsyncpa [#allocation3], 0  ;;  %s620_s0 = inlined_call_operand.vmem [shape: s32[1,1024], index: 0, kind: input, shape index: {}]   ;;  %s621_s1 = inlined_call_operand.vmem [shape: f32[8,2], index: 1, kind: input, shape index: {}]   ;;  %s622_s2 = inlined_call_operand.vmem [shape: f32[8,2], index: 2, kind: input, shape index: {}]   ;;  %s623_s3 = inlined_call_operand.hbm [shape: f32[8,1024], index: 3, kind: output, shape index: {}]  }
   0x1   :  { %10 = vsyncpa [#allocation3 + $0x1], 0  ;;  %s503_s12 = smov 0   ;;  %s505_s13 = smov 0  }
   0x2   :  { %s507_s14 = smov 0   ;;  %s509_s15 = smov 0  }
   0x3 LB: > { %s524_s16 = sadd.s32 4294967295, %s478_s15   ;;  %s359_s17 = sadd.s32 4294967294, %s478_s15   ;;  %s478_s15 = sphi %s509_s15, %s629_s15   ;;  %s474_s14 = sphi %s507_s14, %s628_s14   ;;  %s470_s13 = sphi %s505_s13, %s627_s13   ;;  %s466_s12 = sphi %s503_s12, %s626_s12  }
   0x4   : > { %s528_s18 = sadd.s32 1, %s478_s15   ;;  %s91_s19 = sadd.s32 1, %s474_s14 }
   0x5   : > { %s88_s20 = ssub.s32 %s478_s15, %s528_s18  ;;  %p101_p0 = scmp.ne.s32.totalorder %s474_s14, %s470_s13 }
   0x6   : > { %p89_p1 = scmp.eq.s32.totalorder %s88_s20, 0  ;;  %p102_p2 = scmp.eq.s32.totalorder %s524_s16, 1 }
   0x7   : > { %p107_p3 = scmp.ne.s32.totalorder %s470_s13, %s466_s12  ;;  %p108_p4 = scmp.eq.s32.totalorder %s359_s17, 1 }
   0x8   : > { %s539_s21 = scalar_select %p89_p1, %s474_s14, %s91_s19  }
   0x9   : > { %p541_p5 = por %p102_p2, %p101_p0  ;;  %p545_p6 = por %p108_p4, %p107_p3 }
   0xa   : > { %p362_p7 = scmp.ge.s32.totalorder %s478_s15, 1  ;;  %p140_p8 = scmp.lt.s32.totalorder %s478_s15, 3 }
   0xc   : > { %p141_p9 = pnand %p362_p7, %p140_p8 }
   0xd   : > { %v170_v0 = vld [vmem:[%s621_s1] sm:$0xff] (!%p141_p9)  ;;  %v480_v2 = vmov (!%p141_p9), 0   ;;  %v481_v3 = vmov (!%p141_p9), 1   ;;  %s364_s28 = sshll.u32 (!%p141_p9), %s524_s16, 2  ;;  %v172_v4 = vlaneseq (!%p141_p9)  ;;  %s160_s5 = sand.u32 (!%p141_p9), 1, %s470_s13  }
   0xe   : > { %144 = sbr.rel (%p141_p9) target bundleno = 182 (0xb6), region = 32  ;;  %v171_v1 = vld [vmem:[%s622_s2] sm:$0xff] (!%p141_p9)  ;;  %412 = vset.pattern.permute.xlu0 (!%p141_p9), %v480_v2  ;;  %414 = vset.pattern.permute.xlu1 (!%p141_p9), %v480_v2  ;;  %p164_p10 = scmp.lt.s32.totalorder (!%p141_p9), %s364_s28, 7 }
   0xf   : > { %196 = vperm.xlu0 (!%p141_p9), %412, %v170_v0   ;;  %229 = vperm.xlu1 (!%p141_p9), %414, %v171_v1   ;;  %v173_v5 = vshrl.u32 (!%p141_p9), %v172_v4, 7  ;;  %s363_s6 = sshll.u32 (!%p141_p9), %s160_s5, 5  ;;  %s370_s7 = sshll.u32 (!%p141_p9), %s524_s16, 9 }
  0x10   : > { %s162_s8 = scalar_lea.vmem (!%p141_p9), [#allocation2], %s363_s6  ;;  %s576_s17 = scalar_lea.hbm (!%p141_p9), %s623_s3, %s370_s7 }
  0x11   : > { %v176_v6 = vsub.s32 (!%p141_p9), 0, %v173_v5  ;;  %v180_v7 = vsub.s32 (!%p141_p9), 1, %v173_v5  ;;  %v184_v8 = vsub.s32 (!%p141_p9), 2, %v173_v5  ;;  %v188_v9 = vsub.s32 (!%p141_p9), 3, %v173_v5  ;;  %s303_s9 = sshll.u32 (!%p141_p9), %s162_s8, 4  ;;  %s289_s16 = scalar_lea.sflag (!%p141_p9), [#allocation3], %s160_s5  ;;  %s578_s9 = int_to_ptr.vmem [resolvable:$true] %s303_s9 }
  0x12   : > { %s416_s19 = scalar_lea.vmem (!%p141_p9), %s578_s9, 512  ;;  %s482_s20 = smov (!%p141_p9), [#allocation2]  }
  0x13   : > { %413 = vset.pattern.permute.xlu0 (!%p141_p9), %v481_v3  ;;  %415 = vset.pattern.permute.xlu1 (!%p141_p9), %v481_v3  ;;  %p417_p11 = scmp.ne.s32.totalorder (!%p141_p9), %s578_s9, %s416_s19  ;;  %s420_s24 = sshll.u32 (!%p141_p9), %s482_s20, 4  ;;  %s421_s24 = int_to_ptr.vmem [resolvable:$false] %s420_s24 }
  0x14   : > { %241 = vperm.xlu0 (!%p141_p9), %413, %v170_v0   ;;  %273 = vperm.xlu1 (!%p141_p9), %415, %v171_v1   ;;  %s422_s25 = scalar_lea.vmem (!%p141_p9), %s421_s24, 1024  ;;  %p423_p0 = scmp.lt.s32.totalorder (!%p141_p9), %s578_s9, %s421_s24 }
  0x15   : > { %s631_s28 = smov (!%p164_p10, %s364_s28), 7  ;;  %p418_p12 = pnand %p417_p11, %p541_p5 }
  0x16   : > { %s166_s4 = scalar_lea.vmem %s620_s0, %s631_s28  ;;  %p424_p1 = scmp.lt.s32.totalorder %s422_s25, %s416_s19 }
  0x17   : > { %v169_v10 = vld [vmem:[%s166_s4] sm:$0xf]  ;;  %p419_p13 = pneg %p418_p12 }
  0x18   : > { %v177_v11 = vrot.slane %v169_v10, %v176_v6  ;;  %v181_v12 = vrot.slane %v169_v10, %v180_v7  ;;  %v185_v13 = vrot.slane %v169_v10, %v184_v8  ;;  %v189_v14 = vrot.slane %v169_v10, %v188_v9  ;;  %p425_p2 = por %p424_p1, %p423_p0 }
  0x1a   : > { %vm190_vm0 = vcmp.eq.s32.totalorder %v173_v5, %v177_v11  ;;  %vm191_vm1 = vcmp.eq.s32.totalorder %v173_v5, %v181_v12  ;;  %vm192_vm2 = vcmp.eq.s32.totalorder %v173_v5, %v185_v13  ;;  %vm193_vm3 = vcmp.eq.s32.totalorder %v173_v5, %v189_v14  ;;  %p426_p3 = pnand %p425_p2, %p419_p13 }
  0x8e   : > { %v197_v15 = vpop.permute.xlu0 %196  ;;  %v230_v49 = vpop.permute.xlu1 %229 }
  0x8f   : > { %v199_v16 = vsel %vm190_vm0, %v197_v15, 0.0  ;;  %v200_v17 = vsel %vm191_vm1, %v197_v15, 0.0  ;;  %v201_v18 = vsel %vm192_vm2, %v197_v15, 0.0  ;;  %v202_v19 = vsel %vm193_vm3, %v197_v15, 0.0 }
  0x90   : > { %v203_v20 = vrot.slane %v199_v16, 4  ;;  %v209_v21 = vrot.slane %v200_v17, 4  ;;  %v215_v22 = vrot.slane %v201_v18, 4  ;;  %v221_v23 = vrot.slane %v202_v19, 4 }
  0x92   : > { %v204_v24 = vadd.f32 %v203_v20, %v199_v16  ;;  %v210_v25 = vadd.f32 %v209_v21, %v200_v17  ;;  %v216_v26 = vadd.f32 %v215_v22, %v201_v18  ;;  %v222_v27 = vadd.f32 %v221_v23, %v202_v19 }
  0x93   : > { %v242_v28 = vpop.permute.xlu0 %241  ;;  %v274_v6 = vpop.permute.xlu1 %273 }
  0x94   : > { %v205_v29 = vrot.slane %v204_v24, 2  ;;  %v211_v30 = vrot.slane %v210_v25, 2  ;;  %v217_v31 = vrot.slane %v216_v26, 2  ;;  %v223_v32 = vrot.slane %v222_v27, 2 }
  0x95   : > { %v244_v33 = vsel %vm190_vm0, %v242_v28, 0.0  ;;  %v245_v34 = vsel %vm191_vm1, %v242_v28, 0.0  ;;  %v246_v35 = vsel %vm192_vm2, %v242_v28, 0.0  ;;  %v247_v36 = vsel %vm193_vm3, %v242_v28, 0.0 }
  0x96   : > { %v206_v37 = vadd.f32 %v205_v29, %v204_v24  ;;  %v212_v38 = vadd.f32 %v211_v30, %v210_v25  ;;  %v218_v39 = vadd.f32 %v217_v31, %v216_v26  ;;  %v224_v40 = vadd.f32 %v223_v32, %v222_v27 }
  0x97   : > { %v248_v41 = vrot.slane %v244_v33, 4  ;;  %v254_v42 = vrot.slane %v245_v34, 4  ;;  %v260_v43 = vrot.slane %v246_v35, 4  ;;  %v266_v44 = vrot.slane %v247_v36, 4 }
  0x98   : > { %v207_v50 = vrot.slane %v206_v37, 1  ;;  %v213_v51 = vrot.slane %v212_v38, 1  ;;  %v219_v52 = vrot.slane %v218_v39, 1  ;;  %v225_v53 = vrot.slane %v224_v40, 1 }
  0x99   : > { %v249_v45 = vadd.f32 %v248_v41, %v244_v33  ;;  %v255_v46 = vadd.f32 %v254_v42, %v245_v34  ;;  %v261_v47 = vadd.f32 %v260_v43, %v246_v35  ;;  %v267_v48 = vadd.f32 %v266_v44, %v247_v36 }
  0x9a   : > { %v208_v62 = vadd.f32 %v207_v50, %v206_v37  ;;  %v214_v63 = vadd.f32 %v213_v51, %v212_v38  ;;  %v220_v0 = vadd.f32 %v219_v52, %v218_v39  ;;  %v226_v1 = vadd.f32 %v225_v53, %v224_v40 }
  0x9b   : > { %v250_v54 = vrot.slane %v249_v45, 2  ;;  %v256_v55 = vrot.slane %v255_v46, 2  ;;  %v262_v56 = vrot.slane %v261_v47, 2  ;;  %v268_v57 = vrot.slane %v267_v48, 2 }
  0x9c   : > { %v232_v11 = vmul.f32 %v230_v49, %v208_v62  ;;  %v233_v12 = vmul.f32 %v230_v49, %v214_v63  ;;  %v234_v13 = vmul.f32 %v230_v49, %v220_v0  ;;  %v235_v14 = vmul.f32 %v230_v49, %v226_v1 }
  0x9d   : > { %v251_v58 = vadd.f32 %v250_v54, %v249_v45  ;;  %v257_v59 = vadd.f32 %v256_v55, %v255_v46  ;;  %v263_v60 = vadd.f32 %v262_v56, %v261_v47  ;;  %v269_v61 = vadd.f32 %v268_v57, %v267_v48 }
  0x9f   : > { %v252_v2 = vrot.slane %v251_v58, 1  ;;  %v258_v3 = vrot.slane %v257_v59, 1  ;;  %v264_v4 = vrot.slane %v263_v60, 1  ;;  %v270_v5 = vrot.slane %v269_v61, 1 }
  0xa1   : > { %v253_v7 = vadd.f32 %v252_v2, %v251_v58  ;;  %v259_v8 = vadd.f32 %v258_v3, %v257_v59  ;;  %v265_v9 = vadd.f32 %v264_v4, %v263_v60  ;;  %v271_v10 = vadd.f32 %v270_v5, %v269_v61 }
  0xa3   : > { %v276_v15 = vmul.f32 %v274_v6, %v253_v7  ;;  %v277_v16 = vmul.f32 %v274_v6, %v259_v8  ;;  %v278_v17 = vmul.f32 %v274_v6, %v265_v9  ;;  %v279_v18 = vmul.f32 %v274_v6, %v271_v10 }
  0xa5   : > { %v280_v19 = vadd.f32 %v276_v15, %v232_v11  ;;  %v281_v20 = vadd.f32 %v277_v16, %v233_v12  ;;  %v282_v21 = vadd.f32 %v278_v17, %v234_v13  ;;  %v283_v22 = vadd.f32 %v279_v18, %v235_v14 }
  0xa7   : > { %284 = vst [vmem:[%s162_s8] sm:$0xff] %v280_v19  ;;  %285 = vst [vmem:[%s162_s8 + $0x8] sm:$0xff] %v281_v20 }
  0xa8   : > { %286 = vst [vmem:[%s162_s8 + $0x10] sm:$0xff] %v282_v21  ;;  %287 = vst [vmem:[%s162_s8 + $0x18] sm:$0xff] %v283_v22 }
  0xa9   : > { %429 = shalt.err (!%p426_p3)
}
  0xaa   : > { %s430_s26 = scalar_lea.hbm %s576_s17, 512  ;;  %s434_s29 = scalar_lea.hbm %s623_s3, 1024 }
  0xab   : > { %p431_p4 = scmp.ne.s32.totalorder %s576_s17, %s430_s26  ;;  %p435_p9 = scmp.lt.u32.totalorder %s576_s17, %s623_s3 }
  0xac   : > { %p436_p10 = scmp.lt.u32.totalorder %s434_s29, %s430_s26  ;;  %p438_p12 = scmp.lt.u32.totalorder %s430_s26, %s576_s17 }
  0xad   : > { %p432_p7 = pnand %p431_p4, %p541_p5 }
  0xae   : > { %p437_p11 = por %p436_p10, %p435_p9 }
  0xaf   : > { %p433_p8 = pneg %p432_p7 }
  0xb0   : > { %p439_p13 = por %p438_p12, %p437_p11 }
  0xb2   : > { %p440_p0 = pnand %p439_p13, %p433_p8 }
  0xb4   : > { %443 = shalt.err (!%p440_p0)
}
  0xb5   : > { %371 = dma.vmem_to_hbm [thread:$0]  (%p541_p5), %s578_s9, 512, %s576_s17, %s289_s16  }
  0xb6 PF: > { %p377_p1 = scmp.ge.s32.totalorder %s478_s15, 2  ;;  %s315_s5 = sand.u32 1, %s466_s12  }
  0xb7   : > { %s316_s6 = scalar_lea.sflag [#allocation3], %s315_s5 }
  0xb8   : > { %p374_p2 = pnand %p377_p1, %p545_p6 }
  0xba   : > { %461 = dma.done.wait (!%p374_p2), %s316_s6, 512  }
  0xbb   : > { %463 = vsyncadd (!%p374_p2), %s316_s6, 4294966784  ;;  %p13_p3 = scmp.ge.s32.totalorder %s528_s18, 4   ;;  %s626_s12 = smov %s470_s13 }
  0xbc   : > { %s627_s13 = smov %s474_s14  ;;  %s628_s14 = smov %s539_s21 }
  0xbd   : > { %s629_s15 = smov %s528_s18  ;;  %15 = sbr.rel (!%p13_p3) target bundleno = 3 (0x3), region = 67 }
  0xc4   :  { %321 = vsyncpa [#allocation3], 1 }
  0xc5   :  { %323 = vsyncpa [#allocation3 + $0x1], 1 }

</bundles_post_ra>
